<compile_context>
chip_gen: v5e
topology: v5e:2x2
jax: 0.10.0
libtpu: 0.0.40
codegen_flags: <defaults>
</compile_context>

<pallas_src>
import functools

import jax
import jax.numpy as jnp
from jax import lax
from jax.experimental import pallas as pl
from jax.experimental.pallas import tpu as pltpu


def _round_up(n, m):
    return ((n + m - 1) // m) * m


def actor_critic_kernel(x_ref, w1_ref, b1_ref, w2_ref, b2_ref,
                        wh_ref, bh_ref, probs_ref, value_ref, *, action_dim):
    x = x_ref[...]

    # hidden layer 1: relu(x @ W1 + b1)   (W1 lane-padded to 128 cols)
    h1 = jnp.dot(x, w1_ref[...], preferred_element_type=jnp.float32) + b1_ref[...]
    h1 = jnp.maximum(h1, 0.0)

    # hidden layer 2: relu(h1 @ W2 + b2)  (padded rows/cols of W2 are zero)
    h2 = jnp.dot(h1, w2_ref[...], preferred_element_type=jnp.float32) + b2_ref[...]
    h2 = jnp.maximum(h2, 0.0)

    # fused actor|critic head: lanes [0, A) are actor logits, lane A is the
    # critic value, remaining pad lanes are exact zeros.
    head = jnp.dot(h2, wh_ref[...], preferred_element_type=jnp.float32) + bh_ref[...]

    col = lax.broadcasted_iota(jnp.int32, head.shape, 1)
    is_logit = col < action_dim

    # numerically-stable softmax over the first `action_dim` lanes only;
    # EXACT division so probs sum to 1 at f32 precision.
    masked = jnp.where(is_logit, head, -jnp.inf)
    m = jnp.max(masked, axis=-1, keepdims=True)
    e = jnp.where(is_logit, jnp.exp(masked - m), 0.0)
    denom = jnp.sum(e, axis=-1, keepdims=True)
    probs = e / denom

    # narrow stores: probs -> [tile, A]; critic value extracted via an exact
    # lane-masked reduction (avoids an unaligned 1-lane slice).
    probs_ref[...] = probs[:, :action_dim]
    value_ref[...] = jnp.sum(jnp.where(col == action_dim, head, 0.0),
                             axis=-1, keepdims=True)


def pack_params(params):
    """One-time packing: fuse actor+critic heads and lane-pad H to 128.

    Zero-padding is exact: padded hidden lanes are relu(0+0)=0 and padded
    weight rows contribute nothing. Call this once when params are created
    or updated, NOT per forward call.
    """
    state_dim, H = params["w1"].shape
    action_dim = params["wa"].shape[1]
    hp = _round_up(H, 128)
    head_lanes = _round_up(action_dim + 1, 128)

    w1 = jnp.zeros((state_dim, hp), jnp.float32).at[:, :H].set(params["w1"])
    b1 = jnp.zeros((1, hp), jnp.float32).at[:, :H].set(params["b1"])
    w2 = jnp.zeros((hp, hp), jnp.float32).at[:H, :H].set(params["w2"])
    b2 = jnp.zeros((1, hp), jnp.float32).at[:, :H].set(params["b2"])

    wh = jnp.zeros((hp, head_lanes), jnp.float32)
    wh = wh.at[:H, :action_dim].set(params["wa"])
    wh = wh.at[:H, action_dim:action_dim + 1].set(params["wc"])
    bh = jnp.zeros((1, head_lanes), jnp.float32)
    bh = bh.at[:, :action_dim].set(params["ba"])
    bh = bh.at[:, action_dim:action_dim + 1].set(params["bc"])

    return dict(w1=w1, b1=b1, w2=w2, b2=b2, wh=wh, bh=bh)


@functools.partial(jax.jit, static_argnames=("action_dim", "tile_b"))
def actor_critic_forward(x, packed, *, action_dim, tile_b=1024):
    """x: [B, state_dim] f32. packed: dict from pack_params. Returns (probs, value)."""
    B, state_dim = x.shape
    hp = packed["w1"].shape[1]
    head_lanes = packed["wh"].shape[1]

    # Batch tiling: big tiles (amortize per-step overhead), but cap at
    # ~ceil(B/2) so the grid has >=2 steps -> both v7x TensorCores are used.
    tile = max(8, min(tile_b, _round_up(pl.cdiv(B, 2), 8)))
    b_pad = _round_up(B, tile)
    if b_pad != B:
        x = jnp.pad(x, ((0, b_pad - B), (0, 0)))
    grid = (b_pad // tile,)

    resident = lambda i: (0, 0)  # weights/biases stay resident across batch tiles

    probs, value = pl.pallas_call(
        functools.partial(actor_critic_kernel, action_dim=action_dim),
        out_shape=(
            jax.ShapeDtypeStruct((b_pad, action_dim), jnp.float32),
            jax.ShapeDtypeStruct((b_pad, 1), jnp.float32),
        ),
        grid=grid,
        in_specs=[
            pl.BlockSpec((tile, state_dim), lambda i: (i, 0)),   # x: batch-tiled
            pl.BlockSpec((state_dim, hp), resident),             # w1 (padded)
            pl.BlockSpec((1, hp), resident),                     # b1
            pl.BlockSpec((hp, hp), resident),                    # w2
            pl.BlockSpec((1, hp), resident),                     # b2
            pl.BlockSpec((hp, head_lanes), resident),            # fused head W
            pl.BlockSpec((1, head_lanes), resident),             # fused head b
        ],
        out_specs=(
            pl.BlockSpec((tile, action_dim), lambda i: (i, 0)),  # probs (narrow)
            pl.BlockSpec((tile, 1), lambda i: (i, 0)),           # value (narrow)
        ),
        compiler_params=pltpu.CompilerParams(
            dimension_semantics=("parallel",),
            vmem_limit_bytes=32 * 1024 * 1024,
        ),
    )(x, packed["w1"], packed["b1"], packed["w2"], packed["b2"],
      packed["wh"], packed["bh"])

    # Only trims padded batch rows (tiny copies; identity when b_pad == B).
    return probs[:B], value[:B]


def init_params(key, state_dim, action_dim, n_latent_var=64):
    """Deterministic init mimicking nn.Linear default (U[-1/sqrt(fan_in), +])."""
    def linear(key, fan_in, fan_out):
        kw, kb = jax.random.split(key)
        bound = 1.0 / jnp.sqrt(fan_in)
        w = jax.random.uniform(kw, (fan_in, fan_out), jnp.float32, -bound, bound)
        b = jax.random.uniform(kb, (1, fan_out), jnp.float32, -bound, bound)
        return w, b

    k1, k2, k3, k4 = jax.random.split(key, 4)
    w1, b1 = linear(k1, state_dim, n_latent_var)
    w2, b2 = linear(k2, n_latent_var, n_latent_var)
    wa, ba = linear(k3, n_latent_var, action_dim)
    wc, bc = linear(k4, n_latent_var, 1)
    return dict(w1=w1, b1=b1, w2=w2, b2=b2, wa=wa, ba=ba, wc=wc, bc=bc)


def reference_forward(x, p):
    h1 = jnp.maximum(x @ p["w1"] + p["b1"], 0.0)
    h2 = jnp.maximum(h1 @ p["w2"] + p["b2"], 0.0)
    logits = h2 @ p["wa"] + p["ba"]
    probs = jax.nn.softmax(logits, axis=-1)
    value = h2 @ p["wc"] + p["bc"]
    return probs, value


if __name__ == "__main__":
    state_dim, action_dim, n_latent_var = 16, 6, 64

    key = jax.random.PRNGKey(0)
    kx, kx2, kp = jax.random.split(key, 3)
    params = init_params(kp, state_dim, action_dim, n_latent_var)
    packed = pack_params(params)   # hoisted: packing happens once, not per call

    # --- small batch (single tile) ---
    batch = 8
    x = jax.random.normal(kx, (batch, state_dim), dtype=jnp.float32)
    probs, value = actor_critic_forward(x, packed, action_dim=action_dim)
    jax.block_until_ready((probs, value))

    ref_probs, ref_value = reference_forward(x, params)
    assert probs.shape == (batch, action_dim)
    assert value.shape == (batch, 1)
    # tolerances accommodate default TPU matmul precision in both paths
    assert jnp.allclose(value, ref_value, atol=2e-3, rtol=2e-3)
    assert jnp.allclose(probs, ref_probs, atol=2e-3, rtol=2e-3)
    # exact division -> probs sum to 1 at f32 precision
    assert jnp.allclose(jnp.sum(probs, axis=-1), 1.0, atol=1e-3)

    # --- larger, non-multiple batch (exercises padding + 2-step grid) ---
    batch2 = 300
    x2 = jax.random.normal(kx2, (batch2, state_dim), dtype=jnp.float32)
    probs2, value2 = actor_critic_forward(x2, packed, action_dim=action_dim)
    jax.block_until_ready((probs2, value2))

    ref_probs2, ref_value2 = reference_forward(x2, params)
    assert probs2.shape == (batch2, action_dim)
    assert value2.shape == (batch2, 1)
    assert jnp.allclose(value2, ref_value2, atol=2e-3, rtol=2e-3)
    assert jnp.allclose(probs2, ref_probs2, atol=2e-3, rtol=2e-3)
    assert jnp.allclose(jnp.sum(probs2, axis=-1), 1.0, atol=1e-3)

    print("KERNEL_OK")
</pallas_src>

<mosaic_0001>
module attributes {stable_mosaic.version = 11 : i64} {
  func.func @actor_critic_kernel(%arg0: i32, %arg1: memref<8x16xf32, #tpu.memory_space<vmem>>, %arg2: memref<16x128xf32, #tpu.memory_space<vmem>>, %arg3: memref<1x128xf32, #tpu.memory_space<vmem>>, %arg4: memref<128x128xf32, #tpu.memory_space<vmem>>, %arg5: memref<1x128xf32, #tpu.memory_space<vmem>>, %arg6: memref<128x128xf32, #tpu.memory_space<vmem>>, %arg7: memref<1x128xf32, #tpu.memory_space<vmem>>, %arg8: memref<8x6xf32, #tpu.memory_space<vmem>>, %arg9: memref<8x1xf32, #tpu.memory_space<vmem>>) attributes {dimension_semantics = [#tpu.dimension_semantics<parallel>], iteration_bounds = array<i64: 1>, scalar_prefetch = 0 : i64, scratch_operands = 0 : i64, tpu.core_type = #tpu.core_type<tc>, window_params = [{transform_indices = @transform_0, window_bounds = array<i64: 8, 16>}, {pipeline_mode = #tpu.pipeline_mode<synchronous>, transform_indices = @transform_1, window_bounds = array<i64: 16, 128>}, {pipeline_mode = #tpu.pipeline_mode<synchronous>, transform_indices = @transform_2, window_bounds = array<i64: 1, 128>}, {pipeline_mode = #tpu.pipeline_mode<synchronous>, transform_indices = @transform_3, window_bounds = array<i64: 128, 128>}, {pipeline_mode = #tpu.pipeline_mode<synchronous>, transform_indices = @transform_4, window_bounds = array<i64: 1, 128>}, {pipeline_mode = #tpu.pipeline_mode<synchronous>, transform_indices = @transform_5, window_bounds = array<i64: 128, 128>}, {pipeline_mode = #tpu.pipeline_mode<synchronous>, transform_indices = @transform_6, window_bounds = array<i64: 1, 128>}, {transform_indices = @transform_7, window_bounds = array<i64: 8, 6>}, {transform_indices = @transform_8, window_bounds = array<i64: 8, 1>}]} {
    %c0 = arith.constant 0 : index
    %c0_0 = arith.constant 0 : index
    %0 = vector.load %arg1[%c0, %c0_0] : memref<8x16xf32, #tpu.memory_space<vmem>>, vector<8x16xf32>
    %c0_1 = arith.constant 0 : index
    %c0_2 = arith.constant 0 : index
    %1 = vector.load %arg2[%c0_1, %c0_2] : memref<16x128xf32, #tpu.memory_space<vmem>>, vector<16x128xf32>
    %cst = arith.constant dense<0.000000e+00> : vector<8x128xf32>
    %2 = tpu.matmul %0, %1, %cst {dimension_numbers = #tpu.dot_dimension_numbers<[1], [0], [0], [1], [0, 0, 1, 1], [], []>} : vector<8x16xf32>, vector<16x128xf32>, vector<8x128xf32> -> vector<8x128xf32>
    %c0_3 = arith.constant 0 : index
    %c0_4 = arith.constant 0 : index
    %3 = vector.load %arg3[%c0_3, %c0_4] : memref<1x128xf32, #tpu.memory_space<vmem>>, vector<1x128xf32>
    %4 = vector.broadcast %3 : vector<1x128xf32> to vector<8x128xf32>
    %5 = arith.addf %2, %4 : vector<8x128xf32>
    %cst_5 = arith.constant 0.000000e+00 : f32
    %6 = vector.broadcast %cst_5 : f32 to vector<8x128xf32>
    %7 = arith.maximumf %5, %6 : vector<8x128xf32>
    %c0_6 = arith.constant 0 : index
    %c0_7 = arith.constant 0 : index
    %8 = vector.load %arg4[%c0_6, %c0_7] : memref<128x128xf32, #tpu.memory_space<vmem>>, vector<128x128xf32>
    %cst_8 = arith.constant dense<0.000000e+00> : vector<8x128xf32>
    %9 = tpu.matmul %7, %8, %cst_8 {dimension_numbers = #tpu.dot_dimension_numbers<[1], [0], [0], [1], [0, 0, 1, 1], [], []>} : vector<8x128xf32>, vector<128x128xf32>, vector<8x128xf32> -> vector<8x128xf32>
    %c0_9 = arith.constant 0 : index
    %c0_10 = arith.constant 0 : index
    %10 = vector.load %arg5[%c0_9, %c0_10] : memref<1x128xf32, #tpu.memory_space<vmem>>, vector<1x128xf32>
    %11 = vector.broadcast %10 : vector<1x128xf32> to vector<8x128xf32>
    %12 = arith.addf %9, %11 : vector<8x128xf32>
    %cst_11 = arith.constant 0.000000e+00 : f32
    %13 = vector.broadcast %cst_11 : f32 to vector<8x128xf32>
    %14 = arith.maximumf %12, %13 : vector<8x128xf32>
    %c0_12 = arith.constant 0 : index
    %c0_13 = arith.constant 0 : index
    %15 = vector.load %arg6[%c0_12, %c0_13] : memref<128x128xf32, #tpu.memory_space<vmem>>, vector<128x128xf32>
    %cst_14 = arith.constant dense<0.000000e+00> : vector<8x128xf32>
    %16 = tpu.matmul %14, %15, %cst_14 {dimension_numbers = #tpu.dot_dimension_numbers<[1], [0], [0], [1], [0, 0, 1, 1], [], []>} : vector<8x128xf32>, vector<128x128xf32>, vector<8x128xf32> -> vector<8x128xf32>
    %c0_15 = arith.constant 0 : index
    %c0_16 = arith.constant 0 : index
    %17 = vector.load %arg7[%c0_15, %c0_16] : memref<1x128xf32, #tpu.memory_space<vmem>>, vector<1x128xf32>
    %18 = vector.broadcast %17 : vector<1x128xf32> to vector<8x128xf32>
    %19 = arith.addf %16, %18 : vector<8x128xf32>
    %20 = tpu.iota {dimensions = array<i32: 1>} : vector<8x128xi32>
    %c6_i32 = arith.constant 6 : i32
    %21 = vector.broadcast %c6_i32 : i32 to vector<8x128xi32>
    %22 = arith.cmpi slt, %20, %21 : vector<8x128xi32>
    %cst_17 = arith.constant 0xFF800000 : f32
    %23 = vector.broadcast %cst_17 : f32 to vector<8x128xf32>
    %24 = arith.select %22, %19, %23 : vector<8x128xi1>, vector<8x128xf32>
    %cst_18 = arith.constant dense<0xFF800000> : vector<8xf32>
    %25 = vector.multi_reduction <maximumf>, %24, %cst_18 [1] : vector<8x128xf32> to vector<8xf32>
    %26 = vector.shape_cast %25 : vector<8xf32> to vector<8x1xf32>
    %27 = vector.broadcast %26 : vector<8x1xf32> to vector<8x128xf32>
    %28 = arith.subf %24, %27 : vector<8x128xf32>
    %29 = math.exp %28 : vector<8x128xf32>
    %cst_19 = arith.constant 0.000000e+00 : f32
    %30 = vector.broadcast %cst_19 : f32 to vector<8x128xf32>
    %31 = arith.select %22, %29, %30 : vector<8x128xi1>, vector<8x128xf32>
    %cst_20 = arith.constant dense<0.000000e+00> : vector<8xf32>
    %32 = vector.multi_reduction <add>, %31, %cst_20 [1] : vector<8x128xf32> to vector<8xf32>
    %33 = vector.shape_cast %32 : vector<8xf32> to vector<8x1xf32>
    %34 = vector.broadcast %33 : vector<8x1xf32> to vector<8x128xf32>
    %35 = arith.divf %31, %34 : vector<8x128xf32>
    %36 = vector.extract_strided_slice %35 {offsets = [0, 0], sizes = [8, 6], strides = [1, 1]} : vector<8x128xf32> to vector<8x6xf32>
    %c0_21 = arith.constant 0 : index
    %c0_22 = arith.constant 0 : index
    %37 = vector.load %arg8[%c0_21, %c0_22] : memref<8x6xf32, #tpu.memory_space<vmem>>, vector<8x6xf32>
    tpu.vector_store %arg8[%c0_21, %c0_22], %36 {strides = array<i32>} : memref<8x6xf32, #tpu.memory_space<vmem>>, vector<8x6xf32>,
    %c6_i32_23 = arith.constant 6 : i32
    %38 = vector.broadcast %c6_i32_23 : i32 to vector<8x128xi32>
    %39 = arith.cmpi eq, %20, %38 : vector<8x128xi32>
    %cst_24 = arith.constant 0.000000e+00 : f32
    %40 = vector.broadcast %cst_24 : f32 to vector<8x128xf32>
    %41 = arith.select %39, %19, %40 : vector<8x128xi1>, vector<8x128xf32>
    %cst_25 = arith.constant dense<0.000000e+00> : vector<8xf32>
    %42 = vector.multi_reduction <add>, %41, %cst_25 [1] : vector<8x128xf32> to vector<8xf32>
    %43 = vector.shape_cast %42 : vector<8xf32> to vector<8x1xf32>
    %c0_26 = arith.constant 0 : index
    %c0_27 = arith.constant 0 : index
    %44 = vector.load %arg9[%c0_26, %c0_27] : memref<8x1xf32, #tpu.memory_space<vmem>>, vector<8x1xf32>
    tpu.vector_store %arg9[%c0_26, %c0_27], %43 {strides = array<i32>} : memref<8x1xf32, #tpu.memory_space<vmem>>, vector<8x1xf32>,
    return
  }
  func.func @transform_0(%arg0: i32) -> (i32, i32) {
    %c0_i32 = arith.constant 0 : i32
    %c0_i32_0 = arith.constant 0 : i32
    return %arg0, %c0_i32 : i32, i32
  }
  func.func @transform_1(%arg0: i32) -> (i32, i32) {
    %c0_i32 = arith.constant 0 : i32
    %c0_i32_0 = arith.constant 0 : i32
    %c0_i32_1 = arith.constant 0 : i32
    return %c0_i32, %c0_i32_0 : i32, i32
  }
  func.func @transform_2(%arg0: i32) -> (i32, i32) {
    %c0_i32 = arith.constant 0 : i32
    %c0_i32_0 = arith.constant 0 : i32
    %c0_i32_1 = arith.constant 0 : i32
    return %c0_i32, %c0_i32_0 : i32, i32
  }
  func.func @transform_3(%arg0: i32) -> (i32, i32) {
    %c0_i32 = arith.constant 0 : i32
    %c0_i32_0 = arith.constant 0 : i32
    %c0_i32_1 = arith.constant 0 : i32
    return %c0_i32, %c0_i32_0 : i32, i32
  }
  func.func @transform_4(%arg0: i32) -> (i32, i32) {
    %c0_i32 = arith.constant 0 : i32
    %c0_i32_0 = arith.constant 0 : i32
    %c0_i32_1 = arith.constant 0 : i32
    return %c0_i32, %c0_i32_0 : i32, i32
  }
  func.func @transform_5(%arg0: i32) -> (i32, i32) {
    %c0_i32 = arith.constant 0 : i32
    %c0_i32_0 = arith.constant 0 : i32
    %c0_i32_1 = arith.constant 0 : i32
    return %c0_i32, %c0_i32_0 : i32, i32
  }
  func.func @transform_6(%arg0: i32) -> (i32, i32) {
    %c0_i32 = arith.constant 0 : i32
    %c0_i32_0 = arith.constant 0 : i32
    %c0_i32_1 = arith.constant 0 : i32
    return %c0_i32, %c0_i32_0 : i32, i32
  }
  func.func @transform_7(%arg0: i32) -> (i32, i32) {
    %c0_i32 = arith.constant 0 : i32
    %c0_i32_0 = arith.constant 0 : i32
    return %arg0, %c0_i32 : i32, i32
  }
  func.func @transform_8(%arg0: i32) -> (i32, i32) {
    %c0_i32 = arith.constant 0 : i32
    %c0_i32_0 = arith.constant 0 : i32
    return %arg0, %c0_i32 : i32, i32
  }
}

</mosaic_0001>

<bundles_post_ra>
// kernel: actor_critic_forward.1
= control target key start
LH: loop header
LB: loop body
LE: loop exit
PB: predicated region body
PF: predicated region fallthrough
CT: control target
= control target key end

     0   :  { %14 = vsyncpa [#allocation3], 0  ;;  %s522_s0 = inlined_call_operand.hbm [shape: f32[8,16], index: 0, kind: input, shape index: {}]   ;;  %s523_s1 = inlined_call_operand.hbm [shape: f32[16,128], index: 1, kind: input, shape index: {}]   ;;  %s524_s2 = inlined_call_operand.hbm [shape: f32[1,128], index: 2, kind: input, shape index: {}]   ;;  %s525_s3 = inlined_call_operand.hbm [shape: f32[128,128], index: 3, kind: input, shape index: {}]   ;;  %s526_s4 = inlined_call_operand.vmem [shape: f32[1,128], index: 4, kind: input, shape index: {}]   ;;  %s527_s5 = inlined_call_operand.hbm [shape: f32[128,128], index: 5, kind: input, shape index: {}]   ;;  %s528_s6 = inlined_call_operand.vmem [shape: f32[1,128], index: 6, kind: input, shape index: {}]   ;;  %s529_s7 = inlined_call_operand.hbm [shape: f32[8,6], index: 7, kind: output, shape index: {0}]   ;;  %s530_s8 = inlined_call_operand.vmem [shape: f32[8,1], index: 8, kind: output, shape index: {1}]  }
   0x1   :  { %15 = vsyncpa [#allocation6], 0 }
   0x2   :  { %16 = vsyncpa [#allocation9], 0  ;;  %s33_s29 = sshll.u32 %s523_s1, 4  ;;  %s34_s29 = int_to_ptr.hbm [resolvable:$true] %s33_s29 }
   0x3   :  { %17 = vsyncpa [#allocation4], 0  ;;  %s442_s30 = smov [#allocation5]   ;;  %s57_s12 = sshll.u32 %s525_s3, 4  ;;  %s58_s12 = int_to_ptr.hbm [resolvable:$true] %s57_s12 }
   0x4   :  { %s35_s9 = sshll.u32 %s442_s30, 4  ;;  %s443_s13 = smov 128   ;;  %s36_s9 = int_to_ptr.vmem [resolvable:$true] %s35_s9 }
   0x5   :  { %s444_s14 = smov 8   ;;  %s445_s15 = smov [#allocation8]  }
   0x6   :  { %41 = dma.hbm_to_vmem [thread:$0]  %s34_s29, 256, %s36_s9, [#allocation6], %s443_s13, %s443_s13, %s444_s14  }
   0x7   :  { %s59_s16 = sshll.u32 %s445_s15, 4  ;;  %s23_s19 = sshll.u32 %s522_s0, 4  ;;  %s60_s16 = int_to_ptr.vmem [resolvable:$true] %s59_s16  ;;  %s24_s19 = int_to_ptr.hbm [resolvable:$true] %s23_s19 }
   0x8   :  { %65 = dma.hbm_to_vmem [thread:$0]  %s58_s12, 2048, %s60_s16, [#allocation9], %s443_s13, %s443_s13, %s444_s14  }
   0x9   :  { %s47_s21 = sshll.u32 %s524_s2, 4  ;;  %s446_s22 = smov [#allocation2]   ;;  %s48_s21 = int_to_ptr.hbm [resolvable:$true] %s47_s21 }
   0xa   :  { %s25_s23 = sshll.u32 %s446_s22, 4  ;;  %s447_s3 = smov [#allocation7]   ;;  %s26_s23 = int_to_ptr.vmem [resolvable:$true] %s25_s23 }
   0xb   :  { %28 = dma.hbm_to_vmem [thread:$0]  %s24_s19, 128, %s26_s23, [#allocation3]  }
   0xc   :  { %s49_s24 = sshll.u32 %s447_s3, 4  ;;  %s72_s27 = sshll.u32 %s527_s5, 4  ;;  %s50_s24 = int_to_ptr.vmem [resolvable:$true] %s49_s24  ;;  %s73_s27 = int_to_ptr.hbm [resolvable:$true] %s72_s27 }
   0xd   :  { %52 = dma.hbm_to_vmem [thread:$0]  %s48_s21, 16, %s50_s24, [#allocation6]  }
   0xe   :  { %s448_s0 = smov [#allocation10]  }
   0xf   :  { %s74_s28 = sshll.u32 %s448_s0, 4  ;;  %s75_s28 = int_to_ptr.vmem [resolvable:$true] %s74_s28 }
  0x10   :  { %80 = dma.hbm_to_vmem [thread:$0]  %s73_s27, 2048, %s75_s28, [#allocation9], %s443_s13, %s443_s13, %s444_s14  }
  0x11   :  { %434 = dma.done.wait [#allocation3], 128  }
  0x12   :  { %435 = vsyncadd [#allocation3], 4294967168 }
  0x13   :  { %436 = dma.done.wait [#allocation6], 272  }
  0x14   :  { %437 = vsyncadd [#allocation6], 4294967024 }
  0x15   :  { %438 = dma.done.wait [#allocation9], 4096  }
  0x16   :  { %439 = vsyncadd [#allocation9], 4294963200  ;;  %v105_v0 = vld [vmem:[#allocation5 + $0x8] sm:$0xff]  ;;  %v104_v1 = vld [vmem:[#allocation5] sm:$0xff]  ;;  %vm110_vm0 = vcmask 130048   ;;  %v216_v43 = vlaneseq  ;;  %vm249_vm3 = vcmask 7168  }
  0x17   :  { %128 = vmatpush.msra.mxu0 %v105_v0  ;;  %v103_v2 = vld [vmem:[#allocation2] sm:$0xff]  ;;  %v150_v3 = vld [vmem:[#allocation8 + $0x78] sm:$0xff]  ;;  %v149_v4 = vld [vmem:[#allocation8 + $0x70] sm:$0xff]  ;;  %s258_s12 = sshll.u32 %s529_s7, 4  ;;  %vm243_vm8 = vcmask 48128   ;;  %s259_s12 = int_to_ptr.hbm [resolvable:$true] %s258_s12 }
  0x18   :  { %155 = vmatpush.msra.mxu1 %v150_v3  ;;  %v148_v5 = vld [vmem:[#allocation8 + $0x68] sm:$0xff]  ;;  %v147_v6 = vld [vmem:[#allocation8 + $0x60] sm:$0xff]  ;;  %v146_v7 = vld [vmem:[#allocation8 + $0x58] sm:$0xff]  ;;  %v217_v44 = vand.u32 127, %v216_v43 }
  0x19   :  { %129 = vmatpush.msra.mxu0 %v104_v1  ;;  %v145_v8 = vld [vmem:[#allocation8 + $0x50] sm:$0xff]  ;;  %v144_v9 = vld [vmem:[#allocation8 + $0x48] sm:$0xff]  ;;  %v143_v10 = vld [vmem:[#allocation8 + $0x40] sm:$0xff] }
  0x1a   :  { %274 = vmatmul.msk.f32.vlgmr.msra.gmra.mxu0 %vm110_vm0, %v103_v2  ;;  %156 = vmatpush.msra.mxu1 %v149_v4  ;;  %v142_v11 = vld [vmem:[#allocation8 + $0x38] sm:$0xff]  ;;  %v141_v12 = vld [vmem:[#allocation8 + $0x30] sm:$0xff]  ;;  %v140_v13 = vld [vmem:[#allocation8 + $0x28] sm:$0xff]  ;;  %vm245_vm1 = vcmp.eq.s32.totalorder %v217_v44, 6  ;;  %vm218_vm2 = vcmp.lt.s32.totalorder %v217_v44, 6 }
  0x1b   :  { %v139_v14 = vld [vmem:[#allocation8 + $0x20] sm:$0xff]  ;;  %v138_v15 = vld [vmem:[#allocation8 + $0x18] sm:$0xff]  ;;  %v137_v16 = vld [vmem:[#allocation8 + $0x10] sm:$0xff] }
  0x1c   :  { %157 = vmatpush.msra.mxu1 %v148_v5  ;;  %v136_v17 = vld [vmem:[#allocation8 + $0x8] sm:$0xff]  ;;  %v135_v18 = vld [vmem:[#allocation8] sm:$0xff]  ;;  %v191_v19 = vld [vmem:[#allocation10 + $0x78] sm:$0xff] }
  0x1d   :  { %v190_v20 = vld [vmem:[#allocation10 + $0x70] sm:$0xff]  ;;  %196 = vmatpush.msra.mxu2 %v191_v19  ;;  %v189_v21 = vld [vmem:[#allocation10 + $0x68] sm:$0xff]  ;;  %v188_v22 = vld [vmem:[#allocation10 + $0x60] sm:$0xff] }
  0x1e   :  { %158 = vmatpush.msra.mxu1 %v147_v6  ;;  %v187_v23 = vld [vmem:[#allocation10 + $0x58] sm:$0xff]  ;;  %v186_v24 = vld [vmem:[#allocation10 + $0x50] sm:$0xff]  ;;  %v185_v25 = vld [vmem:[#allocation10 + $0x48] sm:$0xff] }
  0x1f   :  { %197 = vmatpush.msra.mxu2 %v190_v20  ;;  %v184_v26 = vld [vmem:[#allocation10 + $0x40] sm:$0xff]  ;;  %v183_v27 = vld [vmem:[#allocation10 + $0x38] sm:$0xff]  ;;  %v182_v28 = vld [vmem:[#allocation10 + $0x30] sm:$0xff] }
  0x20   :  { %159 = vmatpush.msra.mxu1 %v146_v7  ;;  %v181_v29 = vld [vmem:[#allocation10 + $0x28] sm:$0xff]  ;;  %v180_v30 = vld [vmem:[#allocation10 + $0x20] sm:$0xff]  ;;  %v179_v31 = vld [vmem:[#allocation10 + $0x18] sm:$0xff] }
  0x21   :  { %198 = vmatpush.msra.mxu2 %v189_v21  ;;  %v283_v32 = vld [vmem:[#allocation7] ss:$0 sm:$0xff]  ;;  %v178_v36 = vld [vmem:[#allocation10 + $0x10] sm:$0xff]  ;;  %v177_v37 = vld [vmem:[#allocation10 + $0x8] sm:$0xff] }
  0x22   :  { %160 = vmatpush.msra.mxu1 %v145_v8  ;;  %v176_v38 = vld [vmem:[#allocation10] sm:$0xff] }
  0x23   :  { %199 = vmatpush.msra.mxu2 %v188_v22  ;;  %v284_v39 = vld [vmem:[%s526_s4] ss:$0 sm:$0xff] }
  0x24   :  { %161 = vmatpush.msra.mxu1 %v144_v9  ;;  %v285_v45 = vld [vmem:[%s528_s6] ss:$0 sm:$0xff]  ;;  %s449_s6 = smov [#allocation11]  }
  0x25   :  { %200 = vmatpush.msra.mxu2 %v187_v23 }
  0x26   :  { %162 = vmatpush.msra.mxu1 %v143_v10 }
  0x27   :  { %201 = vmatpush.msra.mxu2 %v186_v24 }
  0x28   :  { %163 = vmatpush.msra.mxu1 %v142_v11 }
  0x29   :  { %202 = vmatpush.msra.mxu2 %v185_v25 }
  0x2a   :  { %164 = vmatpush.msra.mxu1 %v141_v12 }
  0x2b   :  { %203 = vmatpush.msra.mxu2 %v184_v26 }
  0x2c   :  { %165 = vmatpush.msra.mxu1 %v140_v13 }
  0x2d   :  { %204 = vmatpush.msra.mxu2 %v183_v27 }
  0x2e   :  { %166 = vmatpush.msra.mxu1 %v139_v14 }
  0x2f   :  { %205 = vmatpush.msra.mxu2 %v182_v28 }
  0x30   :  { %167 = vmatpush.msra.mxu1 %v138_v15 }
  0x31   :  { %206 = vmatpush.msra.mxu2 %v181_v29 }
  0x32   :  { %168 = vmatpush.msra.mxu1 %v137_v16 }
  0x33   :  { %207 = vmatpush.msra.mxu2 %v180_v30 }
  0x34   :  { %169 = vmatpush.msra.mxu1 %v136_v17 }
  0x35   :  { %208 = vmatpush.msra.mxu2 %v179_v31 }
  0x36   :  { %170 = vmatpush.msra.mxu1 %v135_v18 }
  0x37   :  { %209 = vmatpush.msra.mxu2 %v178_v36 }
  0x39   :  { %210 = vmatpush.msra.mxu2 %v177_v37 }
  0x3b   :  { %211 = vmatpush.msra.mxu2 %v176_v38 }
  0x97   :  { %v131_v33 = vpop.f32.mrf.mxu0 }
  0x98   :  { %v132_v34 = vadd.f32 %v283_v32, %v131_v33 }
  0x9a   :  { %v134_v35 = vmax.f32 %v132_v34, 0.0 }
  0x9c   :  { %171 = vmatmul.f32.vlgmr.msra.gmra.mxu1 %v134_v35 }
 0x119   :  { %v172_v40 = vpop.f32.mrf.mxu1 }
 0x11a   :  { %v173_v41 = vadd.f32 %v284_v39, %v172_v40 }
 0x11c   :  { %v175_v42 = vmax.f32 %v173_v41, 0.0 }
 0x11e   :  { %212 = vmatmul.f32.vlgmr.msra.gmra.mxu2 %v175_v42 }
 0x1a1   :  { %v213_v46 = vpop.f32.mrf.mxu2 }
 0x1a2   :  { %v214_v47 = vadd.f32 %v285_v45, %v213_v46 }
 0x1a4   :  { %v246_v48 = vsel %vm245_vm1, %v214_v47, 0.0  ;;  %v219_v49 = vsel %vm218_vm2, %v214_v47, -inf }
 0x1a5   :  { %247 = vadd.xlane.f32.xlu1 %v246_v48  ;;  %220 = vmax.xlane.f32.xlu0 %v219_v49 }
 0x218   :  { %v248_v50 = vpop.xlane.xlu1 %247  ;;  %v221_v51 = vpop.xlane.xlu0 %220 }
 0x219   :  { %250 = vst.msk [vmem:[%s530_s8] sm:$0xff] %vm249_vm3, %v248_v50  ;;  %v222_v52 = vsub.f32 %v219_v49, %v221_v51  ;;  %s256_s8 = sshll.u32 %s449_s6, 4  ;;  %s257_s8 = int_to_ptr.vmem [resolvable:$true] %s256_s8 }
 0x21b   :  { %v223_v53 = vmul.f32 1.442695, %v222_v52 }
 0x21d   :  { %286 = vpow2.f32 %v223_v53 }
 0x223   :  { %v287_v54 = vpop.eup %286 }
 0x224   :  { %v225_v55 = vsel %vm218_vm2, %v287_v54, 0.0 }
 0x225   :  { %226 = vadd.xlane.f32.xlu0 %v225_v55 }
 0x298   :  { %v227_v56 = vpop.xlane.xlu0 %226 }
 0x299   :  { %288 = vrcp.f32 %v227_v56  ;;  %v239_v60 = vand.u32 2147483648, %v227_v56  ;;  %v237_v62 = vand.u32 2147483647, %v227_v56  ;;  %vm233_vm5 = vweird.f32 %v227_v56 }
 0x29b   :  { %v240_v0 = vor.u32 1.1754944e-38, %v239_v60  ;;  %vm238_vm7 = vcmp.eq.f32.partialorder %v237_v62, 8.507059e+37 }
 0x29f   :  { %v289_v57 = vpop.eup %288 }
 0x2a0   :  { %v229_v58 = vmul.f32 %v289_v57, %v227_v56  ;;  %vm234_vm4 = vweird.f32 %v289_v57 }
 0x2a1   :  { %vm235_vm6 = vmor %vm233_vm5, %vm234_vm4 }
 0x2a2   :  { %v230_v59 = vsub.f32 1.0, %v229_v58 }
 0x2a4   :  { %v231_v61 = vmul.f32 %v289_v57, %v230_v59 }
 0x2a6   :  { %v232_v63 = vadd.f32 %v289_v57, %v231_v61 }
 0x2a8   :  { %v236_v1 = vsel %vm235_vm6, %v289_v57, %v232_v63 }
 0x2a9   :  { %v241_v2 = vsel %vm238_vm7, %v240_v0, %v236_v1 }
 0x2aa   :  { %v242_v3 = vmul.f32 %v241_v2, %v225_v55 }
 0x2ac   :  { %244 = vst.msk [vmem:[#allocation11] sm:$0xff] %vm243_vm8, %v242_v3 }
 0x2ad   :  { %261 = dma.vmem_to_hbm [thread:$0]  %s257_s8, 128, %s259_s12, [#allocation4]  }
 0x2ae   :  { %440 = dma.done.wait [#allocation4], 128  }
 0x2af   :  { %441 = vsyncadd [#allocation4], 4294967168 }
 0x2b0   :  { %270 = vsyncpa [#allocation3], 1 }
 0x2b1   :  { %271 = vsyncpa [#allocation6], 1 }
 0x2b2   :  { %272 = vsyncpa [#allocation9], 1 }
 0x2b3   :  { %273 = vsyncpa [#allocation4], 1 }

</bundles_post_ra>
